<compile_context>
chip_gen: v7x
topology: tpu7x:2x2x1
jax: 0.10.0
libtpu: 0.0.40
codegen_flags: <defaults>
</compile_context>

<pallas_src>
import functools

import jax
import jax.numpy as jnp
from jax.experimental import pallas as pl
from jax.experimental.pallas import tpu as pltpu

_LANE = 128


def _round_up(x, m):
    return ((x + m - 1) // m) * m


def qnet_kernel(x_ref,
                w1_ref, b1_ref,
                w2_ref, b2_ref,
                w3_ref, b3_ref,
                w4_ref, b4_ref,
                o_ref):
    # x and all weights are bf16; accumulate in f32 on the MXU, do bias/ReLU in
    # f32 on the VPU (safe on v5e), re-cast to bf16 to feed the next matmul.
    x = x_ref[...]

    # Layer 1: Linear(input_dim, 256) + ReLU   (Dropout == identity in eval)
    h1 = jnp.dot(x, w1_ref[...], preferred_element_type=jnp.float32) + b1_ref[...]
    h1 = jnp.maximum(h1, 0.0).astype(jnp.bfloat16)

    # Layer 2: Linear(256, 128) + ReLU         (Dropout == identity in eval)
    h2 = jnp.dot(h1, w2_ref[...], preferred_element_type=jnp.float32) + b2_ref[...]
    h2 = jnp.maximum(h2, 0.0).astype(jnp.bfloat16)

    # Layer 3: Linear(128, 64->128 padded) + ReLU.  Padded columns have zero
    # weight and zero bias -> relu(0) == 0, so they are inert.
    h3 = jnp.dot(h2, w3_ref[...], preferred_element_type=jnp.float32) + b3_ref[...]
    h3 = jnp.maximum(h3, 0.0).astype(jnp.bfloat16)

    # Layer 4: Linear(128 padded, num_actions padded to 128 lanes).
    out = jnp.dot(h3, w4_ref[...], preferred_element_type=jnp.float32) + b4_ref[...]
    o_ref[...] = out.astype(o_ref.dtype)  # bf16 store -> half the HBM writeback


def prepare_params(params):
    """One-time conversion of f32 QNet params into the kernel's layout.

    * weights -> bf16, biases -> f32, reshaped defensively to (1, dout)
    * layer-3 width zero-padded 64 -> 128 (w3 cols, b3, w4 rows)
    * num_actions zero-padded to a multiple of 128 (w4 cols, b4)

    Call once at init / after each target-network sync, NOT per forward.
    """
    def bias2d(b):
        return jnp.asarray(b, jnp.float32).reshape(1, -1)

    w1 = jnp.asarray(params["w1"], jnp.float32)
    w2 = jnp.asarray(params["w2"], jnp.float32)
    w3 = jnp.asarray(params["w3"], jnp.float32)
    w4 = jnp.asarray(params["w4"], jnp.float32)
    b1, b2, b3, b4 = (bias2d(params[k]) for k in ("b1", "b2", "b3", "b4"))

    num_actions = w4.shape[1]
    h3_pad = _round_up(w3.shape[1], _LANE)      # 64 -> 128
    na_pad = _round_up(num_actions, _LANE)      # num_actions -> 128

    w3 = jnp.pad(w3, ((0, 0), (0, h3_pad - w3.shape[1])))
    b3 = jnp.pad(b3, ((0, 0), (0, h3_pad - b3.shape[1])))
    w4 = jnp.pad(w4, ((0, h3_pad - w4.shape[0]), (0, na_pad - num_actions)))
    b4 = jnp.pad(b4, ((0, 0), (0, na_pad - num_actions)))

    return {
        "w1": w1.astype(jnp.bfloat16), "b1": b1,
        "w2": w2.astype(jnp.bfloat16), "b2": b2,
        "w3": w3.astype(jnp.bfloat16), "b3": b3,
        "w4": w4.astype(jnp.bfloat16), "b4": b4,
    }


@functools.partial(jax.jit, static_argnames=("num_actions", "tile_b"))
def qnet_forward(x, prepped, *, num_actions, tile_b=1024):
    """x: [B, input_dim] float32. prepped: output of prepare_params.

    Returns [B, num_actions] float32.
    """
    B, input_dim = x.shape
    w1, b1 = prepped["w1"], prepped["b1"]
    w2, b2 = prepped["w2"], prepped["b2"]
    w3, b3 = prepped["w3"], prepped["b3"]
    w4, b4 = prepped["w4"], prepped["b4"]
    na_pad = w4.shape[1]

    # ---- batch tiling -------------------------------------------------------
    # Small batches: one small tile (no padding waste).  Mid/large batches:
    # keep the grid >= 2 steps so ("parallel",) shards across both v7x TCs.
    b8 = _round_up(max(B, 1), 8)
    if b8 <= tile_b:
        if b8 >= 512:
            tile_b_eff = _round_up((b8 + 1) // 2, 8)   # 2 grid steps
        else:
            tile_b_eff = b8                            # 1 small tile
    else:
        tile_b_eff = tile_b
    B_pad = _round_up(b8, tile_b_eff)

    x_p = x.astype(jnp.bfloat16)
    if B_pad != B:
        x_p = jnp.pad(x_p, ((0, B_pad - B), (0, 0)))

    # Weights/biases are tiny (~200 KB total) -> keep each as a single full
    # VMEM block with a constant index_map (weight-stationary); only x / out
    # stream through HBM per grid step.
    full = lambda arr: pl.BlockSpec(arr.shape, lambda i: (0,) * arr.ndim)

    grid = (B_pad // tile_b_eff,)

    flops = 2 * B_pad * (input_dim * 256 + 256 * 128
                         + 128 * w3.shape[1] + w4.shape[0] * na_pad)
    weight_bytes = sum(int(a.size) * a.dtype.itemsize
                       for a in (w1, b1, w2, b2, w3, b3, w4, b4))
    bytes_accessed = B_pad * input_dim * 2 + B_pad * na_pad * 2 + weight_bytes

    out_padded = pl.pallas_call(
        qnet_kernel,
        out_shape=jax.ShapeDtypeStruct((B_pad, na_pad), jnp.bfloat16),
        grid_spec=pltpu.PrefetchScalarGridSpec(
            num_scalar_prefetch=0,
            grid=grid,
            in_specs=[
                pl.BlockSpec((tile_b_eff, input_dim), lambda i: (i, 0)),  # x
                full(w1), full(b1),
                full(w2), full(b2),
                full(w3), full(b3),
                full(w4), full(b4),
            ],
            out_specs=pl.BlockSpec((tile_b_eff, na_pad), lambda i: (i, 0)),
        ),
        compiler_params=pltpu.CompilerParams(
            # Batch steps are independent -> megacore sharding on v7x.
            dimension_semantics=("parallel",),
            # Explicit budget: raises v5e's 16 MiB default to 32 MiB; safely
            # below v7x's 64 MiB physical VMEM.  ~5 MiB live at tile_b=1024.
            vmem_limit_bytes=32 * 1024 * 1024,
        ),
        cost_estimate=pl.CostEstimate(
            flops=flops, transcendentals=0, bytes_accessed=bytes_accessed),
    )(x_p, w1, b1, w2, b2, w3, b3, w4, b4)

    # Slice away batch + lane padding, return f32 Q-values.
    return out_padded[:B, :num_actions].astype(jnp.float32)


def init_params(key, input_dim, num_actions):
    """Deterministic synthetic init (uniform, PyTorch-Linear-like fan-in scaling).

    Biases are stored as (dout,) like a real PyTorch checkpoint; prepare_params
    reshapes them defensively.
    """
    dims = [(input_dim, 256), (256, 128), (128, 64), (64, num_actions)]
    params = {}
    for idx, (din, dout) in enumerate(dims, start=1):
        key, kw, kb = jax.random.split(key, 3)
        bound = 1.0 / jnp.sqrt(din)
        params[f"w{idx}"] = jax.random.uniform(
            kw, (din, dout), jnp.float32, -bound, bound)
        params[f"b{idx}"] = jax.random.uniform(
            kb, (dout,), jnp.float32, -bound, bound)
    return params


def qnet_reference(x, params):
    """Pure-JAX reference emulating the kernel's bf16-operand / f32-acc math."""
    def mm(a, w):
        return jnp.dot(a.astype(jnp.bfloat16).astype(jnp.float32),
                       w.astype(jnp.bfloat16).astype(jnp.float32))
    h = jnp.maximum(mm(x, params["w1"]) + params["b1"], 0.0)
    h = jnp.maximum(mm(h, params["w2"]) + params["b2"], 0.0)
    h = jnp.maximum(mm(h, params["w3"]) + params["b3"], 0.0)
    return mm(h, params["w4"]) + params["b4"]


if __name__ == "__main__":
    key = jax.random.PRNGKey(0)
    input_dim = 16
    num_actions = 4

    k_x, k_p, k_x2 = jax.random.split(key, 3)
    params = init_params(k_p, input_dim, num_actions)
    prepped = prepare_params(params)          # one-time weight prep (hoisted)

    # Small batch (typical DQN action selection): single small tile, grid=1.
    x_small = jax.random.normal(k_x, (8, input_dim), jnp.float32)
    out_small = jax.block_until_ready(
        qnet_forward(x_small, prepped, num_actions=num_actions))
    ref_small = qnet_reference(x_small, params)
    assert out_small.shape == (8, num_actions)
    assert jnp.allclose(out_small, ref_small, atol=2e-2, rtol=2e-2), \
        "small-batch mismatch vs JAX reference"

    # Larger, non-tile-multiple batch: exercises batch padding and the
    # 2-step "parallel" grid (megacore path on v7x).
    x_big = jax.random.normal(k_x2, (1000, input_dim), jnp.float32)
    out_big = jax.block_until_ready(
        qnet_forward(x_big, prepped, num_actions=num_actions))
    ref_big = qnet_reference(x_big, params)
    assert out_big.shape == (1000, num_actions)
    assert jnp.allclose(out_big, ref_big, atol=2e-2, rtol=2e-2), \
        "large-batch mismatch vs JAX reference"

    print("KERNEL_OK")
</pallas_src>

<mosaic_0001>
module attributes {stable_mosaic.version = 11 : i64} {
  func.func @qnet_kernel(%arg0: i32, %arg1: memref<8x16xbf16, #tpu.memory_space<vmem>>, %arg2: memref<16x256xbf16, #tpu.memory_space<vmem>>, %arg3: memref<1x256xf32, #tpu.memory_space<vmem>>, %arg4: memref<256x128xbf16, #tpu.memory_space<vmem>>, %arg5: memref<1x128xf32, #tpu.memory_space<vmem>>, %arg6: memref<128x128xbf16, #tpu.memory_space<vmem>>, %arg7: memref<1x128xf32, #tpu.memory_space<vmem>>, %arg8: memref<128x128xbf16, #tpu.memory_space<vmem>>, %arg9: memref<1x128xf32, #tpu.memory_space<vmem>>, %arg10: memref<8x128xbf16, #tpu.memory_space<vmem>>) attributes {dimension_semantics = [#tpu.dimension_semantics<parallel>], iteration_bounds = array<i64: 1>, scalar_prefetch = 0 : i64, scratch_operands = 0 : i64, tpu.core_type = #tpu.core_type<tc>, window_params = [{transform_indices = @transform_0, window_bounds = array<i64: 8, 16>}, {pipeline_mode = #tpu.pipeline_mode<synchronous>, transform_indices = @transform_1, window_bounds = array<i64: 16, 256>}, {pipeline_mode = #tpu.pipeline_mode<synchronous>, transform_indices = @transform_2, window_bounds = array<i64: 1, 256>}, {pipeline_mode = #tpu.pipeline_mode<synchronous>, transform_indices = @transform_3, window_bounds = array<i64: 256, 128>}, {pipeline_mode = #tpu.pipeline_mode<synchronous>, transform_indices = @transform_4, window_bounds = array<i64: 1, 128>}, {pipeline_mode = #tpu.pipeline_mode<synchronous>, transform_indices = @transform_5, window_bounds = array<i64: 128, 128>}, {pipeline_mode = #tpu.pipeline_mode<synchronous>, transform_indices = @transform_6, window_bounds = array<i64: 1, 128>}, {pipeline_mode = #tpu.pipeline_mode<synchronous>, transform_indices = @transform_7, window_bounds = array<i64: 128, 128>}, {pipeline_mode = #tpu.pipeline_mode<synchronous>, transform_indices = @transform_8, window_bounds = array<i64: 1, 128>}, {transform_indices = @transform_9, window_bounds = array<i64: 8, 128>}]} {
    %c0 = arith.constant 0 : index
    %c0_0 = arith.constant 0 : index
    %0 = vector.load %arg1[%c0, %c0_0] : memref<8x16xbf16, #tpu.memory_space<vmem>>, vector<8x16xbf16>
    %c0_1 = arith.constant 0 : index
    %c0_2 = arith.constant 0 : index
    %1 = vector.load %arg2[%c0_1, %c0_2] : memref<16x256xbf16, #tpu.memory_space<vmem>>, vector<16x256xbf16>
    %cst = arith.constant dense<0.000000e+00> : vector<8x256xf32>
    %2 = tpu.matmul %0, %1, %cst {dimension_numbers = #tpu.dot_dimension_numbers<[1], [0], [0], [1], [0, 0, 1, 1], [], []>} : vector<8x16xbf16>, vector<16x256xbf16>, vector<8x256xf32> -> vector<8x256xf32>
    %c0_3 = arith.constant 0 : index
    %c0_4 = arith.constant 0 : index
    %3 = vector.load %arg3[%c0_3, %c0_4] : memref<1x256xf32, #tpu.memory_space<vmem>>, vector<1x256xf32>
    %4 = vector.broadcast %3 : vector<1x256xf32> to vector<8x256xf32>
    %5 = arith.addf %2, %4 : vector<8x256xf32>
    %cst_5 = arith.constant 0.000000e+00 : f32
    %6 = vector.broadcast %cst_5 : f32 to vector<8x256xf32>
    %7 = arith.maximumf %5, %6 : vector<8x256xf32>
    %8 = arith.truncf %7 : vector<8x256xf32> to vector<8x256xbf16>
    %c0_6 = arith.constant 0 : index
    %c0_7 = arith.constant 0 : index
    %9 = vector.load %arg4[%c0_6, %c0_7] : memref<256x128xbf16, #tpu.memory_space<vmem>>, vector<256x128xbf16>
    %cst_8 = arith.constant dense<0.000000e+00> : vector<8x128xf32>
    %10 = tpu.matmul %8, %9, %cst_8 {dimension_numbers = #tpu.dot_dimension_numbers<[1], [0], [0], [1], [0, 0, 1, 1], [], []>} : vector<8x256xbf16>, vector<256x128xbf16>, vector<8x128xf32> -> vector<8x128xf32>
    %c0_9 = arith.constant 0 : index
    %c0_10 = arith.constant 0 : index
    %11 = vector.load %arg5[%c0_9, %c0_10] : memref<1x128xf32, #tpu.memory_space<vmem>>, vector<1x128xf32>
    %12 = vector.broadcast %11 : vector<1x128xf32> to vector<8x128xf32>
    %13 = arith.addf %10, %12 : vector<8x128xf32>
    %cst_11 = arith.constant 0.000000e+00 : f32
    %14 = vector.broadcast %cst_11 : f32 to vector<8x128xf32>
    %15 = arith.maximumf %13, %14 : vector<8x128xf32>
    %16 = arith.truncf %15 : vector<8x128xf32> to vector<8x128xbf16>
    %c0_12 = arith.constant 0 : index
    %c0_13 = arith.constant 0 : index
    %17 = vector.load %arg6[%c0_12, %c0_13] : memref<128x128xbf16, #tpu.memory_space<vmem>>, vector<128x128xbf16>
    %cst_14 = arith.constant dense<0.000000e+00> : vector<8x128xf32>
    %18 = tpu.matmul %16, %17, %cst_14 {dimension_numbers = #tpu.dot_dimension_numbers<[1], [0], [0], [1], [0, 0, 1, 1], [], []>} : vector<8x128xbf16>, vector<128x128xbf16>, vector<8x128xf32> -> vector<8x128xf32>
    %c0_15 = arith.constant 0 : index
    %c0_16 = arith.constant 0 : index
    %19 = vector.load %arg7[%c0_15, %c0_16] : memref<1x128xf32, #tpu.memory_space<vmem>>, vector<1x128xf32>
    %20 = vector.broadcast %19 : vector<1x128xf32> to vector<8x128xf32>
    %21 = arith.addf %18, %20 : vector<8x128xf32>
    %cst_17 = arith.constant 0.000000e+00 : f32
    %22 = vector.broadcast %cst_17 : f32 to vector<8x128xf32>
    %23 = arith.maximumf %21, %22 : vector<8x128xf32>
    %24 = arith.truncf %23 : vector<8x128xf32> to vector<8x128xbf16>
    %c0_18 = arith.constant 0 : index
    %c0_19 = arith.constant 0 : index
    %25 = vector.load %arg8[%c0_18, %c0_19] : memref<128x128xbf16, #tpu.memory_space<vmem>>, vector<128x128xbf16>
    %cst_20 = arith.constant dense<0.000000e+00> : vector<8x128xf32>
    %26 = tpu.matmul %24, %25, %cst_20 {dimension_numbers = #tpu.dot_dimension_numbers<[1], [0], [0], [1], [0, 0, 1, 1], [], []>} : vector<8x128xbf16>, vector<128x128xbf16>, vector<8x128xf32> -> vector<8x128xf32>
    %c0_21 = arith.constant 0 : index
    %c0_22 = arith.constant 0 : index
    %27 = vector.load %arg9[%c0_21, %c0_22] : memref<1x128xf32, #tpu.memory_space<vmem>>, vector<1x128xf32>
    %28 = vector.broadcast %27 : vector<1x128xf32> to vector<8x128xf32>
    %29 = arith.addf %26, %28 : vector<8x128xf32>
    %30 = arith.truncf %29 : vector<8x128xf32> to vector<8x128xbf16>
    %c0_23 = arith.constant 0 : index
    %c0_24 = arith.constant 0 : index
    %31 = vector.load %arg10[%c0_23, %c0_24] : memref<8x128xbf16, #tpu.memory_space<vmem>>, vector<8x128xbf16>
    tpu.vector_store %arg10[%c0_23, %c0_24], %30 {strides = array<i32>} : memref<8x128xbf16, #tpu.memory_space<vmem>>, vector<8x128xbf16>,
    return
  }
  func.func @transform_0(%arg0: i32) -> (i32, i32) {
    %c0_i32 = arith.constant 0 : i32
    %c0_i32_0 = arith.constant 0 : i32
    return %arg0, %c0_i32 : i32, i32
  }
  func.func @transform_1(%arg0: i32) -> (i32, i32) {
    %c0_i32 = arith.constant 0 : i32
    %c0_i32_0 = arith.constant 0 : i32
    %c0_i32_1 = arith.constant 0 : i32
    return %c0_i32, %c0_i32_0 : i32, i32
  }
  func.func @transform_2(%arg0: i32) -> (i32, i32) {
    %c0_i32 = arith.constant 0 : i32
    %c0_i32_0 = arith.constant 0 : i32
    %c0_i32_1 = arith.constant 0 : i32
    return %c0_i32, %c0_i32_0 : i32, i32
  }
  func.func @transform_3(%arg0: i32) -> (i32, i32) {
    %c0_i32 = arith.constant 0 : i32
    %c0_i32_0 = arith.constant 0 : i32
    %c0_i32_1 = arith.constant 0 : i32
    return %c0_i32, %c0_i32_0 : i32, i32
  }
  func.func @transform_4(%arg0: i32) -> (i32, i32) {
    %c0_i32 = arith.constant 0 : i32
    %c0_i32_0 = arith.constant 0 : i32
    %c0_i32_1 = arith.constant 0 : i32
    return %c0_i32, %c0_i32_0 : i32, i32
  }
  func.func @transform_5(%arg0: i32) -> (i32, i32) {
    %c0_i32 = arith.constant 0 : i32
    %c0_i32_0 = arith.constant 0 : i32
    %c0_i32_1 = arith.constant 0 : i32
    return %c0_i32, %c0_i32_0 : i32, i32
  }
  func.func @transform_6(%arg0: i32) -> (i32, i32) {
    %c0_i32 = arith.constant 0 : i32
    %c0_i32_0 = arith.constant 0 : i32
    %c0_i32_1 = arith.constant 0 : i32
    return %c0_i32, %c0_i32_0 : i32, i32
  }
  func.func @transform_7(%arg0: i32) -> (i32, i32) {
    %c0_i32 = arith.constant 0 : i32
    %c0_i32_0 = arith.constant 0 : i32
    %c0_i32_1 = arith.constant 0 : i32
    return %c0_i32, %c0_i32_0 : i32, i32
  }
  func.func @transform_8(%arg0: i32) -> (i32, i32) {
    %c0_i32 = arith.constant 0 : i32
    %c0_i32_0 = arith.constant 0 : i32
    %c0_i32_1 = arith.constant 0 : i32
    return %c0_i32, %c0_i32_0 : i32, i32
  }
  func.func @transform_9(%arg0: i32) -> (i32, i32) {
    %c0_i32 = arith.constant 0 : i32
    %c0_i32_0 = arith.constant 0 : i32
    return %arg0, %c0_i32 : i32, i32
  }
}

</mosaic_0001>

<bundles_post_ra>
// kernel: qnet_forward.1
= control target key start
LH: loop header
LB: loop body
LE: loop exit
PB: predicated region body
PF: predicated region fallthrough
CT: control target
= control target key end

     0   :  { %14 = vsyncpa [#allocation3], 0  ;;  %s940_s0 = inlined_call_operand.vmem [shape: bf16[8,16], index: 0, kind: input, shape index: {}]   ;;  %s941_s1 = inlined_call_operand.vmem [shape: bf16[16,256], index: 1, kind: input, shape index: {}]   ;;  %s942_s2 = inlined_call_operand.vmem [shape: f32[1,256], index: 2, kind: input, shape index: {}]   ;;  %s943_s3 = inlined_call_operand.hbm [shape: bf16[256,128], index: 3, kind: input, shape index: {}]   ;;  %s944_s4 = inlined_call_operand.vmem [shape: f32[1,128], index: 4, kind: input, shape index: {}]   ;;  %s945_s5 = inlined_call_operand.hbm [shape: bf16[128,128], index: 5, kind: input, shape index: {}]   ;;  %s946_s6 = inlined_call_operand.vmem [shape: f32[1,128], index: 6, kind: input, shape index: {}]   ;;  %s947_s7 = inlined_call_operand.hbm [shape: bf16[128,128], index: 7, kind: input, shape index: {}]   ;;  %s948_s8 = inlined_call_operand.vmem [shape: f32[1,128], index: 8, kind: input, shape index: {}]   ;;  %s949_s9 = inlined_call_operand.vmem [shape: bf16[8,128], index: 9, kind: output, shape index: {}]  }
   0x1   :  { %15 = vsyncpa [#allocation5], 0  ;;  %s788_s30 = smov [#allocation4]   ;;  %s789_s11 = smov [#allocation2]  }
   0x2   :  { %s41_s10 = sshll.u32 %s788_s30, 4  ;;  %s27_s12 = sshll.u32 %s789_s11, 4  ;;  %s42_s10 = int_to_ptr.vmem [resolvable:$true] %s41_s10  ;;  %s846_s12 = int_to_ptr.vmem [resolvable:$true] %s27_s12 }
   0x3   :  { %s718_s15 = scalar_lea.hbm %s945_s5, 1024 }
   0x4   :  { %p719_p0 = scmp.ne.s32.totalorder %s945_s5, %s718_s15  ;;  %p722_p1 = scmp.lt.u32.totalorder %s718_s15, %s945_s5 }
   0x6   :  { %p724_p2 = pnand %p722_p1, %p719_p0 }
   0x8   :  { %727 = shalt.err (!%p724_p2)
}
   0x9   :  { %s728_s20 = scalar_lea.vmem %s42_s10, 1024  ;;  %p733_p4 = scmp.lt.s32.totalorder %s42_s10, %s42_s10 }
   0xa   :  { %p729_p3 = scmp.ne.s32.totalorder %s42_s10, %s728_s20  ;;  %p734_p5 = scmp.lt.s32.totalorder %s728_s20, %s728_s20 }
   0xc   :  { %p735_p6 = por %p734_p5, %p733_p4 }
   0xe   :  { %p736_p7 = pnand %p735_p6, %p729_p3 }
  0x10   :  { %739 = shalt.err (!%p736_p7)
}
  0x11   :  { %s790_s21 = smov 64   ;;  %s791_s22 = smov 4  }
  0x12   :  { %47 = dma.hbm_to_vmem [thread:$0]  %s945_s5, 1024, %s42_s10, [#allocation5], %s790_s21, %s790_s21, %s791_s22  }
  0x13   :  { %s740_s27 = scalar_lea.hbm %s943_s3, 2048 }
  0x14   :  { %p741_p8 = scmp.ne.s32.totalorder %s943_s3, %s740_s27  ;;  %p744_p9 = scmp.lt.u32.totalorder %s740_s27, %s943_s3 }
  0x16   :  { %p746_p10 = pnand %p744_p9, %p741_p8 }
  0x18   :  { %749 = shalt.err (!%p746_p10)
}
  0x19   :  { %s750_s13 = scalar_lea.vmem %s846_s12, 2048  ;;  %p755_p12 = scmp.lt.s32.totalorder %s846_s12, %s846_s12 }
  0x1a   :  { %p751_p11 = scmp.ne.s32.totalorder %s846_s12, %s750_s13  ;;  %p756_p13 = scmp.lt.s32.totalorder %s750_s13, %s750_s13 }
  0x1c   :  { %p757_p0 = por %p756_p13, %p755_p12 }
  0x1e   :  { %p758_p1 = pnand %p757_p0, %p751_p11 }
  0x20   :  { %761 = shalt.err (!%p758_p1)
}
  0x21   :  { %33 = dma.hbm_to_vmem [thread:$0]  %s943_s3, 2048, %s846_s12, [#allocation3], %s790_s21, %s790_s21, %s791_s22  }
  0x22   :  { %s792_s14 = smov [#allocation6]   ;;  %s762_s18 = scalar_lea.hbm %s947_s7, 1024 }
  0x23   :  { %s55_s15 = sshll.u32 %s792_s14, 4  ;;  %p763_p2 = scmp.ne.s32.totalorder %s947_s7, %s762_s18  ;;  %s56_s15 = int_to_ptr.vmem [resolvable:$true] %s55_s15 }
  0x24   :  { %p766_p3 = scmp.lt.u32.totalorder %s762_s18, %s947_s7 }
  0x26   :  { %p768_p4 = pnand %p766_p3, %p763_p2 }
  0x28   :  { %771 = shalt.err (!%p768_p4)
}
  0x29   :  { %s772_s25 = scalar_lea.vmem %s56_s15, 1024  ;;  %p777_p6 = scmp.lt.s32.totalorder %s56_s15, %s56_s15 }
  0x2a   :  { %p773_p5 = scmp.ne.s32.totalorder %s56_s15, %s772_s25  ;;  %p778_p7 = scmp.lt.s32.totalorder %s772_s25, %s772_s25 }
  0x2c   :  { %p779_p8 = por %p778_p7, %p777_p6 }
  0x2e   :  { %p780_p9 = pnand %p779_p8, %p773_p5 }
  0x30   :  { %783 = shalt.err (!%p780_p9)
}
  0x31   :  { %61 = dma.hbm_to_vmem [thread:$0]  %s947_s7, 1024, %s56_s15, [#allocation5], %s790_s21, %s790_s21, %s791_s22  }
  0x32   :  { %784 = dma.done.wait [#allocation3], 2048  }
  0x33   :  { %785 = vsyncadd [#allocation3], 4294965248 }
  0x34   :  { %786 = dma.done.wait [#allocation5], 2048  }
  0x35   :  { %787 = vsyncadd [#allocation5], 4294965248  ;;  %v793_v0 = vmov 0   ;;  %v683_v1 = vld [vmem:[%s941_s1 + $0x4] ss:$8 sps:$4 sm:$0xff]   ;;  %v686_v4 = vld [vmem:[#allocation2 + $0x40] sm:$0xff]   ;;  %v79_v27 = vlaneseq }
  0x36   :  { %135 = vmatprep.mubr.bf16.mxu0 %v793_v0  ;;  %v685_v2 = vld [vmem:[%s941_s1] ss:$8 sps:$4 sm:$0xff]   ;;  %103 = vmatprep.subr.bf16.mxu0 %v683_v1  ;;  %vm99_vm0 = vcmask 130048   ;;  %v687_v5 = vld [vmem:[#allocation2] sm:$0xff]   ;;  %v688_v6 = vld [vmem:[#allocation2 + $0x48] sm:$0xff]   ;;  %v794_v21 = vmov 0.0  }
  0x37   :  { %v74_v3 = vld [vmem:[%s940_s0] sm:$0xf]  ;;  %104 = vmatpush1.bf16.msra.mxu0 %v685_v2  ;;  %595 = vmatprep.subr.bf16.mxu1 %v686_v4  ;;  %v689_v7 = vld [vmem:[#allocation2 + $0x8] sm:$0xff]   ;;  %v692_v10 = vld [vmem:[#allocation2 + $0x58] sm:$0xff]   ;;  %v80_v28 = vshrl.u32 %v79_v27, 7  ;;  %vm795_vm1 = vmmov 0  }
  0x38   :  { %596 = vmatpush3.bf16.msra.mxu1 %v687_v5  ;;  %v690_v8 = vld [vmem:[#allocation2 + $0x50] sm:$0xff]   ;;  %v693_v11 = vld [vmem:[#allocation2 + $0x18] sm:$0xff]   ;;  %v694_v12 = vld [vmem:[#allocation2 + $0x60] sm:$0xff]   ;;  %635 = vmatprep.subr.bf16.mxu0 %v794_v21 }
  0x39   :  { %597 = vmatprep.subr.bf16.mxu1 %v688_v6  ;;  %v691_v9 = vld [vmem:[#allocation2 + $0x10] sm:$0xff]   ;;  %v695_v13 = vld [vmem:[#allocation2 + $0x20] sm:$0xff]   ;;  %v696_v14 = vld [vmem:[#allocation2 + $0x68] sm:$0xff]   ;;  %v81_v29 = vsub.s32 0, %v80_v28  ;;  %v85_v31 = vsub.s32 1, %v80_v28 }
  0x3a   :  { %559 = vmatmul.mubr.msk.bf16.vlgmr.msra.gmra.mrb[0].mxu0 %vm99_vm0, %v74_v3  ;;  %v697_v15 = vld [vmem:[#allocation2 + $0x28] sm:$0xff]   ;;  %v698_v16 = vld [vmem:[#allocation2 + $0x70] sm:$0xff]   ;;  %v700_v18 = vld [vmem:[#allocation2 + $0x78] sm:$0xff]  }
  0x3b   :  { %v699_v17 = vld [vmem:[#allocation2 + $0x30] sm:$0xff]   ;;  %v701_v19 = vld [vmem:[#allocation2 + $0x38] sm:$0xff]   ;;  %v702_v20 = vld [vmem:[#allocation4] sm:$0xff]   ;;  %651 = vmatprep.mubr.msk.bf16.mxu0 %vm795_vm1, %v794_v21 }
  0x3c   :  { %598 = vmatpush3.bf16.msra.mxu1 %v689_v7  ;;  %636 = vmatpush3.bf16.msra.mxu0 %v702_v20  ;;  %v703_v22 = vld [vmem:[#allocation4 + $0x8] sm:$0xff]   ;;  %v704_v23 = vld [vmem:[#allocation4 + $0x10] sm:$0xff]   ;;  %v705_v24 = vld [vmem:[#allocation4 + $0x18] sm:$0xff]  }
  0x3d   :  { %599 = vmatprep.subr.bf16.mxu1 %v690_v8  ;;  %637 = vmatprep.subr.bf16.mxu0 %v794_v21  ;;  %v706_v25 = vld [vmem:[#allocation4 + $0x20] sm:$0xff]   ;;  %v707_v26 = vld [vmem:[#allocation4 + $0x28] sm:$0xff]   ;;  %v77_v30 = vld [vmem:[%s942_s2] sm:$0x3] }
  0x3e   :  { %v82_v32 = vrot.slane %v77_v30, %v81_v29  ;;  %v86_v33 = vrot.slane %v77_v30, %v85_v31  ;;  %v708_v44 = vld [vmem:[#allocation4 + $0x30] sm:$0xff]   ;;  %v709_v45 = vld [vmem:[#allocation4 + $0x38] sm:$0xff]   ;;  %v710_v46 = vld [vmem:[#allocation6] sm:$0xff]  }
  0x3f   :  { %v711_v47 = vld [vmem:[#allocation6 + $0x8] sm:$0xff]   ;;  %v712_v48 = vld [vmem:[#allocation6 + $0x10] sm:$0xff]   ;;  %v713_v49 = vld [vmem:[#allocation6 + $0x18] sm:$0xff]  }
  0x40   :  { %600 = vmatpush3.bf16.msra.mxu1 %v691_v9  ;;  %638 = vmatpush3.bf16.msra.mxu0 %v703_v22  ;;  %v714_v50 = vld [vmem:[#allocation6 + $0x20] sm:$0xff]   ;;  %v715_v51 = vld [vmem:[#allocation6 + $0x28] sm:$0xff]   ;;  %v560_v53 = vld [vmem:[%s944_s4] ss:$0 sm:$0xff] }
  0x41   :  { %601 = vmatprep.subr.bf16.mxu1 %v692_v10  ;;  %639 = vmatprep.subr.bf16.mxu0 %v794_v21  ;;  %v716_v61 = vld [vmem:[#allocation6 + $0x30] sm:$0xff]   ;;  %v717_v62 = vld [vmem:[#allocation6 + $0x38] sm:$0xff]  }
  0x42   :  { %v577_v63 = vld [vmem:[%s946_s6] ss:$0 sm:$0xff] }
  0x43   :  { %v586_v7 = vld [vmem:[%s948_s8] ss:$0 sm:$0xff] }
  0x44   :  { %602 = vmatpush3.bf16.msra.mxu1 %v693_v11  ;;  %640 = vmatpush3.bf16.msra.mxu0 %v704_v23 }
  0x45   :  { %603 = vmatprep.subr.bf16.mxu1 %v694_v12  ;;  %641 = vmatprep.subr.bf16.mxu0 %v794_v21 }
  0x48   :  { %604 = vmatpush3.bf16.msra.mxu1 %v695_v13  ;;  %642 = vmatpush3.bf16.msra.mxu0 %v705_v24 }
  0x49   :  { %605 = vmatprep.subr.bf16.mxu1 %v696_v14  ;;  %643 = vmatprep.subr.bf16.mxu0 %v794_v21 }
  0x4c   :  { %606 = vmatpush3.bf16.msra.mxu1 %v697_v15  ;;  %644 = vmatpush3.bf16.msra.mxu0 %v706_v25 }
  0x4d   :  { %607 = vmatprep.subr.bf16.mxu1 %v698_v16  ;;  %645 = vmatprep.subr.bf16.mxu0 %v794_v21 }
  0x50   :  { %608 = vmatpush3.bf16.msra.mxu1 %v699_v17  ;;  %646 = vmatpush3.bf16.msra.mxu0 %v707_v26 }
  0x51   :  { %609 = vmatprep.subr.bf16.mxu1 %v700_v18  ;;  %647 = vmatprep.subr.bf16.mxu0 %v794_v21 }
  0x54   :  { %610 = vmatpush3.bf16.msra.mxu1 %v701_v19  ;;  %648 = vmatpush3.bf16.msra.mxu0 %v708_v44 }
  0x55   :  { %655 = vmatprep.subr.bf16.mxu1 %v794_v21  ;;  %649 = vmatprep.subr.bf16.mxu0 %v794_v21 }
  0x58   :  { %650 = vmatpush3.bf16.msra.mxu0 %v709_v45 }
 0x10d   :  { %v137_v34 = vpop.f32.mrb[0].mxu0 }
 0x10e   :  { %v138_v35 = vadd.f32 %v137_v34, %v82_v32  ;;  %v139_v36 = vpop.f32.mrb[1].mxu0 }
 0x10f   :  { %v140_v37 = vadd.f32 %v139_v36, %v86_v33  ;;  %v141_v38 = vpop.f32.mrb[2].mxu0 }
 0x110   :  { %v144_v39 = vmax.f32 %v138_v35, 0.0  ;;  %v142_v40 = vpop.f32.mrb[3].mxu0 }
 0x111   :  { %v145_v41 = vmax.f32 %v140_v37, 0.0 }
 0x112   :  { %v146_v43 = vpack.c.bf16 %v144_v39, %v144_v39 }
 0x113   :  { %v147_v42 = vpack.c.bf16 %v145_v41, %v145_v41 }
 0x115   :  { %315 = vmatprep.mubr.bf16.mxu1 %v147_v42 }
 0x116   :  { %316 = vmatmul.mubr.bf16.vlgmr.msra.gmra.mrb[0].mxu1 %v146_v43 }
 0x117   :  { %671 = vmatprep.mubr.msk.bf16.mxu1 %vm795_vm1, %v794_v21  ;;  %656 = vmatpush3.bf16.msra.mxu1 %v710_v46 }
 0x118   :  { %657 = vmatprep.subr.bf16.mxu1 %v794_v21 }
 0x11b   :  { %658 = vmatpush3.bf16.msra.mxu1 %v711_v47 }
 0x11c   :  { %659 = vmatprep.subr.bf16.mxu1 %v794_v21 }
 0x11f   :  { %660 = vmatpush3.bf16.msra.mxu1 %v712_v48 }
 0x120   :  { %661 = vmatprep.subr.bf16.mxu1 %v794_v21 }
 0x123   :  { %662 = vmatpush3.bf16.msra.mxu1 %v713_v49 }
 0x124   :  { %663 = vmatprep.subr.bf16.mxu1 %v794_v21 }
 0x127   :  { %664 = vmatpush3.bf16.msra.mxu1 %v714_v50 }
 0x128   :  { %665 = vmatprep.subr.bf16.mxu1 %v794_v21 }
 0x12b   :  { %666 = vmatpush3.bf16.msra.mxu1 %v715_v51 }
 0x12c   :  { %667 = vmatprep.subr.bf16.mxu1 %v794_v21 }
 0x12f   :  { %668 = vmatpush3.bf16.msra.mxu1 %v716_v61 }
 0x130   :  { %669 = vmatprep.subr.bf16.mxu1 %v794_v21 }
 0x133   :  { %670 = vmatpush3.bf16.msra.mxu1 %v717_v62 }
 0x1e9   :  { %v611_v52 = vpop.f32.mrb[0].mxu1 }
 0x1ea   :  { %v612_v54 = vpop.f32.mrb[1].mxu1 }
 0x1eb   :  { %v613_v55 = vadd.f32 %v612_v54, %v611_v52  ;;  %v614_v56 = vpop.f32.mrb[2].mxu1 }
 0x1ec   :  { %v615_v57 = vpop.f32.mrb[3].mxu1 }
 0x1ed   :  { %v318_v58 = vadd.f32 %v613_v55, %v560_v53 }
 0x1ef   :  { %v323_v59 = vmax.f32 %v318_v58, 0.0 }
 0x1f1   :  { %v324_v60 = vpack.c.bf16 %v323_v59, %v323_v59 }
 0x1f3   :  { %652 = vmatmul.mubr.bf16.vlgmr.msra.gmra.mrb[4].mxu0 %v324_v60 }
 0x2c6   :  { %v430_v0 = vpop.f32.mrb[4].mxu0 }
 0x2c7   :  { %v431_v1 = vadd.f32 %v577_v63, %v430_v0  ;;  %v653_v2 = vpop.f32.mrb[5].mxu0 }
 0x2c8   :  { %v433_v3 = vpop.f32.mrb[6].mxu0 }
 0x2c9   :  { %v436_v4 = vmax.f32 %v431_v1, 0.0  ;;  %v654_v5 = vpop.f32.mrb[7].mxu0 }
 0x2cb   :  { %v437_v6 = vpack.c.bf16 %v436_v4, %v436_v4 }
 0x2cd   :  { %672 = vmatmul.mubr.bf16.vlgmr.msra.gmra.mrb[4].mxu1 %v437_v6 }
 0x3a0   :  { %v543_v8 = vpop.f32.mrb[4].mxu1 }
 0x3a1   :  { %v544_v9 = vadd.f32 %v586_v7, %v543_v8  ;;  %v673_v10 = vpop.f32.mrb[5].mxu1 }
 0x3a2   :  { %v546_v11 = vpop.f32.mrb[6].mxu1 }
 0x3a3   :  { %v549_v12 = vpack.c.bf16 %v544_v9, %v544_v9  ;;  %v674_v13 = vpop.f32.mrb[7].mxu1 }
 0x3a5   :  { %550 = vst [vmem:[%s949_s9] sm:$0xf] %v549_v12 }
 0x3a6   :  { %555 = vsyncpa [#allocation3], 1 }
 0x3a7   :  { %556 = vsyncpa [#allocation5], 1 }

</bundles_post_ra>
